<compile_context>
chip_gen: v5e
topology: v5e:2x2
jax: 0.10.0
libtpu: 0.0.40
codegen_flags: <defaults>
</compile_context>

<pallas_src>
import functools

import jax
import jax.numpy as jnp
from jax import lax
from jax.experimental import pallas as pl
from jax.experimental.pallas import tpu as pltpu


def _neg_pearson_kernel(preds0_ref, labels_ref, out_ref,
                        acc_x, acc_y, acc_xy, acc_x2, acc_y2, *, n_total):
    j = pl.program_id(0)

    @pl.when(j == 0)
    def _init():
        acc_x[...] = jnp.zeros_like(acc_x)
        acc_y[...] = jnp.zeros_like(acc_y)
        acc_xy[...] = jnp.zeros_like(acc_xy)
        acc_x2[...] = jnp.zeros_like(acc_x2)
        acc_y2[...] = jnp.zeros_like(acc_y2)

    x = preds0_ref[...]            # (1, TN)  == preds[0] tile
    y = labels_ref[...]            # (B, TN)

    # Pre-reduce labels over the sublane (batch) axis once per tile; the
    # broadcast multiply against preds[0] then only touches a (1, TN) vector.
    col = jnp.sum(y, axis=0, keepdims=True)        # sum_b labels[b, n]
    col2 = jnp.sum(y * y, axis=0, keepdims=True)   # sum_b labels[b, n]^2

    # Lane-vector partial accumulation (VPU-only inner loop; one XLU scalar
    # collapse in the finalize step instead of per grid step).
    acc_x[...] += x
    acc_y[...] += col
    acc_xy[...] += x * col
    acc_x2[...] += x * x
    acc_y2[...] += col2

    @pl.when(j == pl.num_programs(0) - 1)
    def _finalize():
        sum_x = jnp.sum(acc_x[...])
        sum_y = jnp.sum(acc_y[...])
        sum_xy = jnp.sum(acc_xy[...])
        sum_x2 = jnp.sum(acc_x2[...])
        sum_y2 = jnp.sum(acc_y2[...])
        n = jnp.float32(n_total)
        num = n * sum_xy - sum_x * sum_y
        den_sq = (n * sum_x2 - sum_x * sum_x) * (n * sum_y2 - sum_y * sum_y)
        # rsqrt on the EUP instead of sqrt + divide on the VALU.
        out_ref[0, 0] = jnp.float32(1.0) - num * lax.rsqrt(den_sq)


def _pick_tile(n):
    # Lane-dense tile widths (multiples of 128); fall back to the full width
    # (always legal since it equals the array dim) for small / odd N.
    for tn in (2048, 1024, 512, 256, 128):
        if n % tn == 0:
            return tn
    return n


def neg_pearson_loss(preds, labels):
    """preds: (B, N) float32, labels: (B, N) float32 -> scalar float32."""
    preds = preds.astype(jnp.float32)
    labels = labels.astype(jnp.float32)
    b, n = labels.shape

    # Only row 0 of preds is ever read -> only DMA that row into VMEM.
    preds0 = preds[0:1, :]                       # (1, N)

    tn = _pick_tile(n)
    grid = (n // tn,)

    kernel = functools.partial(_neg_pearson_kernel, n_total=preds.shape[1])

    out = pl.pallas_call(
        kernel,
        out_shape=jax.ShapeDtypeStruct((1, 1), jnp.float32),
        grid_spec=pltpu.PrefetchScalarGridSpec(
            num_scalar_prefetch=0,
            grid=grid,
            in_specs=[
                pl.BlockSpec((1, tn), lambda j: (0, j)),   # preds[0] tile
                pl.BlockSpec((b, tn), lambda j: (0, j)),   # labels tile
            ],
            out_specs=pl.BlockSpec((1, 1), lambda j: (0, 0),
                                   memory_space=pltpu.MemorySpace.SMEM),
            scratch_shapes=[pltpu.VMEM((1, tn), jnp.float32)] * 5,
        ),
        compiler_params=pltpu.CompilerParams(
            dimension_semantics=("arbitrary",),   # accumulator carried across N
        ),
    )(preds0, labels)
    return out[0, 0]


def neg_pearson_ref(preds, labels):
    # Pure-JAX reference (mirrors the PyTorch code literally).
    n = jnp.float32(preds.shape[1])
    sum_x = jnp.sum(preds[0])
    sum_y = jnp.sum(labels)
    sum_xy = jnp.sum(preds[0] * labels)
    sum_x2 = jnp.sum(preds[0] ** 2)
    sum_y2 = jnp.sum(labels ** 2)
    pearson = (n * sum_xy - sum_x * sum_y) / jnp.sqrt(
        (n * sum_x2 - sum_x ** 2) * (n * sum_y2 - sum_y ** 2)
    )
    return 1.0 - pearson


if __name__ == "__main__":
    # Neg_Pearson has no learnable parameters -- nothing to initialize.
    key = jax.random.PRNGKey(0)

    # Small shape consistent with the module (batch of rPPG signals).
    kp, kl = jax.random.split(key)
    B, N = 4, 128
    preds = jax.random.normal(kp, (B, N), dtype=jnp.float32)
    labels = jax.random.normal(kl, (B, N), dtype=jnp.float32)

    loss = jax.block_until_ready(neg_pearson_loss(preds, labels))
    ref = jax.block_until_ready(neg_pearson_ref(preds, labels))
    assert jnp.allclose(loss, ref, rtol=1e-4, atol=1e-4), (loss, ref)

    # Second check exercising the multi-step lane-tiled grid (N=2560 -> 5 tiles).
    kp2, kl2 = jax.random.split(jax.random.PRNGKey(1))
    B2, N2 = 8, 2560
    preds2 = jax.random.normal(kp2, (B2, N2), dtype=jnp.float32)
    labels2 = jax.random.normal(kl2, (B2, N2), dtype=jnp.float32)

    loss2 = jax.block_until_ready(neg_pearson_loss(preds2, labels2))
    ref2 = jax.block_until_ready(neg_pearson_ref(preds2, labels2))
    assert jnp.allclose(loss2, ref2, rtol=1e-3, atol=1e-3), (loss2, ref2)

    print("KERNEL_OK")
</pallas_src>

<mosaic_0001>
module attributes {stable_mosaic.version = 11 : i64} {
  func.func @_neg_pearson_kernel(%arg0: i32, %arg1: memref<1x128xf32, #tpu.memory_space<vmem>>, %arg2: memref<4x128xf32, #tpu.memory_space<vmem>>, %arg3: memref<1x1xf32, #tpu.memory_space<smem>>, %arg4: memref<1x128xf32, #tpu.memory_space<vmem>>, %arg5: memref<1x128xf32, #tpu.memory_space<vmem>>, %arg6: memref<1x128xf32, #tpu.memory_space<vmem>>, %arg7: memref<1x128xf32, #tpu.memory_space<vmem>>, %arg8: memref<1x128xf32, #tpu.memory_space<vmem>>) attributes {dimension_semantics = [#tpu.dimension_semantics<arbitrary>], iteration_bounds = array<i64: 1>, scalar_prefetch = 0 : i64, scratch_operands = 5 : i64, tpu.core_type = #tpu.core_type<tc>, window_params = [{transform_indices = @transform_0, window_bounds = array<i64: 1, 128>}, {transform_indices = @transform_1, window_bounds = array<i64: 4, 128>}, {transform_indices = @transform_2, window_bounds = array<i64: 1, 1>}]} {
    %c0_i32 = arith.constant 0 : i32
    %0 = arith.cmpi eq, %arg0, %c0_i32 : i32
    %1 = arith.extui %0 : i1 to i32
    %c0_i32_0 = arith.constant 0 : i32
    %2 = arith.cmpi ne, %1, %c0_i32_0 : i32
    scf.if %2 {
      %cst_27 = arith.constant 0.000000e+00 : f32
      %30 = vector.broadcast %cst_27 : f32 to vector<1x128xf32>
      %c0_28 = arith.constant 0 : index
      %c0_29 = arith.constant 0 : index
      %31 = vector.load %arg4[%c0_28, %c0_29] : memref<1x128xf32, #tpu.memory_space<vmem>>, vector<1x128xf32>
      tpu.vector_store %arg4[%c0_28, %c0_29], %30 {strides = array<i32>} : memref<1x128xf32, #tpu.memory_space<vmem>>, vector<1x128xf32>,
      %cst_30 = arith.constant 0.000000e+00 : f32
      %32 = vector.broadcast %cst_30 : f32 to vector<1x128xf32>
      %c0_31 = arith.constant 0 : index
      %c0_32 = arith.constant 0 : index
      %33 = vector.load %arg5[%c0_31, %c0_32] : memref<1x128xf32, #tpu.memory_space<vmem>>, vector<1x128xf32>
      tpu.vector_store %arg5[%c0_31, %c0_32], %32 {strides = array<i32>} : memref<1x128xf32, #tpu.memory_space<vmem>>, vector<1x128xf32>,
      %cst_33 = arith.constant 0.000000e+00 : f32
      %34 = vector.broadcast %cst_33 : f32 to vector<1x128xf32>
      %c0_34 = arith.constant 0 : index
      %c0_35 = arith.constant 0 : index
      %35 = vector.load %arg6[%c0_34, %c0_35] : memref<1x128xf32, #tpu.memory_space<vmem>>, vector<1x128xf32>
      tpu.vector_store %arg6[%c0_34, %c0_35], %34 {strides = array<i32>} : memref<1x128xf32, #tpu.memory_space<vmem>>, vector<1x128xf32>,
      %cst_36 = arith.constant 0.000000e+00 : f32
      %36 = vector.broadcast %cst_36 : f32 to vector<1x128xf32>
      %c0_37 = arith.constant 0 : index
      %c0_38 = arith.constant 0 : index
      %37 = vector.load %arg7[%c0_37, %c0_38] : memref<1x128xf32, #tpu.memory_space<vmem>>, vector<1x128xf32>
      tpu.vector_store %arg7[%c0_37, %c0_38], %36 {strides = array<i32>} : memref<1x128xf32, #tpu.memory_space<vmem>>, vector<1x128xf32>,
      %cst_39 = arith.constant 0.000000e+00 : f32
      %38 = vector.broadcast %cst_39 : f32 to vector<1x128xf32>
      %c0_40 = arith.constant 0 : index
      %c0_41 = arith.constant 0 : index
      %39 = vector.load %arg8[%c0_40, %c0_41] : memref<1x128xf32, #tpu.memory_space<vmem>>, vector<1x128xf32>
      tpu.vector_store %arg8[%c0_40, %c0_41], %38 {strides = array<i32>} : memref<1x128xf32, #tpu.memory_space<vmem>>, vector<1x128xf32>,
    } else {
    }
    %c0 = arith.constant 0 : index
    %c0_1 = arith.constant 0 : index
    %3 = vector.load %arg1[%c0, %c0_1] : memref<1x128xf32, #tpu.memory_space<vmem>>, vector<1x128xf32>
    %c0_2 = arith.constant 0 : index
    %c0_3 = arith.constant 0 : index
    %4 = vector.load %arg2[%c0_2, %c0_3] : memref<4x128xf32, #tpu.memory_space<vmem>>, vector<4x128xf32>
    %cst = arith.constant dense<0.000000e+00> : vector<128xf32>
    %5 = vector.multi_reduction <add>, %4, %cst [0] : vector<4x128xf32> to vector<128xf32>
    %6 = vector.shape_cast %5 : vector<128xf32> to vector<1x128xf32>
    %7 = arith.mulf %4, %4 : vector<4x128xf32>
    %cst_4 = arith.constant dense<0.000000e+00> : vector<128xf32>
    %8 = vector.multi_reduction <add>, %7, %cst_4 [0] : vector<4x128xf32> to vector<128xf32>
    %9 = vector.shape_cast %8 : vector<128xf32> to vector<1x128xf32>
    %c0_5 = arith.constant 0 : index
    %c0_6 = arith.constant 0 : index
    %10 = vector.load %arg4[%c0_5, %c0_6] : memref<1x128xf32, #tpu.memory_space<vmem>>, vector<1x128xf32>
    %11 = arith.addf %10, %3 : vector<1x128xf32>
    %c0_7 = arith.constant 0 : index
    %c0_8 = arith.constant 0 : index
    %12 = vector.load %arg4[%c0_7, %c0_8] : memref<1x128xf32, #tpu.memory_space<vmem>>, vector<1x128xf32>
    tpu.vector_store %arg4[%c0_7, %c0_8], %11 {strides = array<i32>} : memref<1x128xf32, #tpu.memory_space<vmem>>, vector<1x128xf32>,
    %c0_9 = arith.constant 0 : index
    %c0_10 = arith.constant 0 : index
    %13 = vector.load %arg5[%c0_9, %c0_10] : memref<1x128xf32, #tpu.memory_space<vmem>>, vector<1x128xf32>
    %14 = arith.addf %13, %6 : vector<1x128xf32>
    %c0_11 = arith.constant 0 : index
    %c0_12 = arith.constant 0 : index
    %15 = vector.load %arg5[%c0_11, %c0_12] : memref<1x128xf32, #tpu.memory_space<vmem>>, vector<1x128xf32>
    tpu.vector_store %arg5[%c0_11, %c0_12], %14 {strides = array<i32>} : memref<1x128xf32, #tpu.memory_space<vmem>>, vector<1x128xf32>,
    %c0_13 = arith.constant 0 : index
    %c0_14 = arith.constant 0 : index
    %16 = vector.load %arg6[%c0_13, %c0_14] : memref<1x128xf32, #tpu.memory_space<vmem>>, vector<1x128xf32>
    %17 = arith.mulf %3, %6 : vector<1x128xf32>
    %18 = arith.addf %16, %17 : vector<1x128xf32>
    %c0_15 = arith.constant 0 : index
    %c0_16 = arith.constant 0 : index
    %19 = vector.load %arg6[%c0_15, %c0_16] : memref<1x128xf32, #tpu.memory_space<vmem>>, vector<1x128xf32>
    tpu.vector_store %arg6[%c0_15, %c0_16], %18 {strides = array<i32>} : memref<1x128xf32, #tpu.memory_space<vmem>>, vector<1x128xf32>,
    %c0_17 = arith.constant 0 : index
    %c0_18 = arith.constant 0 : index
    %20 = vector.load %arg7[%c0_17, %c0_18] : memref<1x128xf32, #tpu.memory_space<vmem>>, vector<1x128xf32>
    %21 = arith.mulf %3, %3 : vector<1x128xf32>
    %22 = arith.addf %20, %21 : vector<1x128xf32>
    %c0_19 = arith.constant 0 : index
    %c0_20 = arith.constant 0 : index
    %23 = vector.load %arg7[%c0_19, %c0_20] : memref<1x128xf32, #tpu.memory_space<vmem>>, vector<1x128xf32>
    tpu.vector_store %arg7[%c0_19, %c0_20], %22 {strides = array<i32>} : memref<1x128xf32, #tpu.memory_space<vmem>>, vector<1x128xf32>,
    %c0_21 = arith.constant 0 : index
    %c0_22 = arith.constant 0 : index
    %24 = vector.load %arg8[%c0_21, %c0_22] : memref<1x128xf32, #tpu.memory_space<vmem>>, vector<1x128xf32>
    %25 = arith.addf %24, %9 : vector<1x128xf32>
    %c0_23 = arith.constant 0 : index
    %c0_24 = arith.constant 0 : index
    %26 = vector.load %arg8[%c0_23, %c0_24] : memref<1x128xf32, #tpu.memory_space<vmem>>, vector<1x128xf32>
    tpu.vector_store %arg8[%c0_23, %c0_24], %25 {strides = array<i32>} : memref<1x128xf32, #tpu.memory_space<vmem>>, vector<1x128xf32>,
    %c0_i32_25 = arith.constant 0 : i32
    %27 = arith.cmpi eq, %arg0, %c0_i32_25 : i32
    %28 = arith.extui %27 : i1 to i32
    %c0_i32_26 = arith.constant 0 : i32
    %29 = arith.cmpi ne, %28, %c0_i32_26 : i32
    scf.if %29 {
      %c0_27 = arith.constant 0 : index
      %c0_28 = arith.constant 0 : index
      %30 = vector.load %arg4[%c0_27, %c0_28] : memref<1x128xf32, #tpu.memory_space<vmem>>, vector<1x128xf32>
      %31 = vector.shape_cast %30 : vector<1x128xf32> to vector<1x1x128xf32>
      %cst_29 = arith.constant dense<0.000000e+00> : vector<1xf32>
      %32 = vector.multi_reduction <add>, %31, %cst_29 [1, 2] : vector<1x1x128xf32> to vector<1xf32>
      %33 = vector.shape_cast %32 : vector<1xf32> to vector<1x1x1xf32>
      %34 = vector.extract %33[0, 0, 0] : f32 from vector<1x1x1xf32>
      %c0_30 = arith.constant 0 : index
      %c0_31 = arith.constant 0 : index
      %35 = vector.load %arg5[%c0_30, %c0_31] : memref<1x128xf32, #tpu.memory_space<vmem>>, vector<1x128xf32>
      %36 = vector.shape_cast %35 : vector<1x128xf32> to vector<1x1x128xf32>
      %cst_32 = arith.constant dense<0.000000e+00> : vector<1xf32>
      %37 = vector.multi_reduction <add>, %36, %cst_32 [1, 2] : vector<1x1x128xf32> to vector<1xf32>
      %38 = vector.shape_cast %37 : vector<1xf32> to vector<1x1x1xf32>
      %39 = vector.extract %38[0, 0, 0] : f32 from vector<1x1x1xf32>
      %c0_33 = arith.constant 0 : index
      %c0_34 = arith.constant 0 : index
      %40 = vector.load %arg6[%c0_33, %c0_34] : memref<1x128xf32, #tpu.memory_space<vmem>>, vector<1x128xf32>
      %41 = vector.shape_cast %40 : vector<1x128xf32> to vector<1x1x128xf32>
      %cst_35 = arith.constant dense<0.000000e+00> : vector<1xf32>
      %42 = vector.multi_reduction <add>, %41, %cst_35 [1, 2] : vector<1x1x128xf32> to vector<1xf32>
      %43 = vector.shape_cast %42 : vector<1xf32> to vector<1x1x1xf32>
      %44 = vector.extract %43[0, 0, 0] : f32 from vector<1x1x1xf32>
      %c0_36 = arith.constant 0 : index
      %c0_37 = arith.constant 0 : index
      %45 = vector.load %arg7[%c0_36, %c0_37] : memref<1x128xf32, #tpu.memory_space<vmem>>, vector<1x128xf32>
      %46 = vector.shape_cast %45 : vector<1x128xf32> to vector<1x1x128xf32>
      %cst_38 = arith.constant dense<0.000000e+00> : vector<1xf32>
      %47 = vector.multi_reduction <add>, %46, %cst_38 [1, 2] : vector<1x1x128xf32> to vector<1xf32>
      %48 = vector.shape_cast %47 : vector<1xf32> to vector<1x1x1xf32>
      %49 = vector.extract %48[0, 0, 0] : f32 from vector<1x1x1xf32>
      %c0_39 = arith.constant 0 : index
      %c0_40 = arith.constant 0 : index
      %50 = vector.load %arg8[%c0_39, %c0_40] : memref<1x128xf32, #tpu.memory_space<vmem>>, vector<1x128xf32>
      %51 = vector.shape_cast %50 : vector<1x128xf32> to vector<1x1x128xf32>
      %cst_41 = arith.constant dense<0.000000e+00> : vector<1xf32>
      %52 = vector.multi_reduction <add>, %51, %cst_41 [1, 2] : vector<1x1x128xf32> to vector<1xf32>
      %53 = vector.shape_cast %52 : vector<1xf32> to vector<1x1x1xf32>
      %54 = vector.extract %53[0, 0, 0] : f32 from vector<1x1x1xf32>
      %cst_42 = arith.constant 1.280000e+02 : f32
      %55 = arith.mulf %cst_42, %44 : f32
      %56 = arith.mulf %34, %39 : f32
      %57 = arith.subf %55, %56 : f32
      %cst_43 = arith.constant 1.280000e+02 : f32
      %58 = arith.mulf %cst_43, %49 : f32
      %59 = arith.mulf %34, %34 : f32
      %60 = arith.subf %58, %59 : f32
      %cst_44 = arith.constant 1.280000e+02 : f32
      %61 = arith.mulf %cst_44, %54 : f32
      %62 = arith.mulf %39, %39 : f32
      %63 = arith.subf %61, %62 : f32
      %64 = arith.mulf %60, %63 : f32
      %65 = math.rsqrt %64 : f32
      %66 = arith.mulf %57, %65 : f32
      %cst_45 = arith.constant 1.000000e+00 : f32
      %67 = arith.subf %cst_45, %66 : f32
      %c0_46 = arith.constant 0 : index
      %c0_47 = arith.constant 0 : index
      %68 = memref.load %arg3[%c0_46, %c0_47] : memref<1x1xf32, #tpu.memory_space<smem>>
      memref.store %67, %arg3[%c0_46, %c0_47] : memref<1x1xf32, #tpu.memory_space<smem>>
    } else {
    }
    return
  }
  func.func @transform_0(%arg0: i32) -> (i32, i32) {
    %c0_i32 = arith.constant 0 : i32
    %c0_i32_0 = arith.constant 0 : i32
    return %c0_i32, %arg0 : i32, i32
  }
  func.func @transform_1(%arg0: i32) -> (i32, i32) {
    %c0_i32 = arith.constant 0 : i32
    %c0_i32_0 = arith.constant 0 : i32
    return %c0_i32, %arg0 : i32, i32
  }
  func.func @transform_2(%arg0: i32) -> (i32, i32) {
    %c0_i32 = arith.constant 0 : i32
    %c0_i32_0 = arith.constant 0 : i32
    %c0_i32_1 = arith.constant 0 : i32
    return %c0_i32, %c0_i32_0 : i32, i32
  }
}

</mosaic_0001>

<bundles_post_ra>
// kernel: tpu_custom_call.1
= control target key start
LH: loop header
LB: loop body
LE: loop exit
PB: predicated region body
PF: predicated region fallthrough
CT: control target
= control target key end

     0   :  { %7 = vsyncpa [#allocation8], 0  ;;  %s303_s0 = inlined_call_operand.hbm [shape: f32[1,128], index: 0, kind: input, shape index: {}]   ;;  %s304_s1 = inlined_call_operand.hbm [shape: f32[4,128], index: 1, kind: input, shape index: {}]   ;;  %s305_s2 = inlined_call_operand.hbm [shape: f32[1,1], index: 2, kind: output, shape index: {}]  }
   0x1   :  { %8 = vsyncpa [#allocation11], 0 }
   0x2   :  { %9 = vsyncpa [#allocation9], 0  ;;  %s15_s11 = sshll.u32 %s303_s0, 4  ;;  %s270_s12 = smov [#allocation7]   ;;  %s16_s11 = int_to_ptr.hbm [resolvable:$true] %s15_s11 }
   0x3   :  { %s17_s13 = sshll.u32 %s270_s12, 4  ;;  %s26_s16 = sshll.u32 %s304_s1, 4  ;;  %s18_s13 = int_to_ptr.vmem [resolvable:$true] %s17_s13  ;;  %s27_s16 = int_to_ptr.hbm [resolvable:$true] %s26_s16 }
   0x4   :  { %20 = dma.hbm_to_vmem [thread:$0]  %s16_s11, 16, %s18_s13, [#allocation8]  }
   0x5   :  { %s271_s17 = smov [#allocation10]  }
   0x6   :  { %s28_s18 = sshll.u32 %s271_s17, 4  ;;  %s29_s18 = int_to_ptr.vmem [resolvable:$true] %s28_s18 }
   0x7   :  { %31 = dma.hbm_to_vmem [thread:$0]  %s27_s16, 64, %s29_s18, [#allocation11]  }
   0x8   :  { %264 = dma.done.wait [#allocation8], 16  }
   0x9   :  { %265 = vsyncadd [#allocation8], 4294967280 }
   0xa   :  { %266 = dma.done.wait [#allocation11], 64  }
   0xb   :  { %267 = vsyncadd [#allocation11], 4294967232  ;;  %v272_v0 = vmov 0.0   ;;  %vm51_vm0 = vcmask 1043456   ;;  %v49_v1 = vld [vmem:[#allocation7] sm:$0x1] }
   0xc   :  { %44 = vst [vmem:[#allocation2] sm:$0x1] %v272_v0  ;;  %v50_v2 = vld [vmem:[#allocation10] sm:$0xf]  ;;  %v78_v6 = vmul.f32 %v49_v1, %v49_v1  ;;  %vm88_vm1 = vcmask 1040384   ;;  %s174_s6 = sshll.u32 %s305_s2, 4  ;;  %s175_s6 = int_to_ptr.hbm [resolvable:$true] %s174_s6 }
   0xd   :  { %45 = vst [vmem:[#allocation3] sm:$0x1] %v272_v0  ;;  %v52_v4 = vsel %vm51_vm0, %v50_v2, 0.0  ;;  %v59_v5 = vmul.f32 %v50_v2, %v50_v2  ;;  %s273_s10 = smov [#allocation12]  }
   0xe   :  { %46 = vst [vmem:[#allocation4] sm:$0x1] %v272_v0  ;;  %v53_v8 = vrot.slane %v52_v4, 4 }
   0xf   :  { %47 = vst [vmem:[#allocation5] sm:$0x1] %v272_v0  ;;  %v60_v9 = vsel %vm51_vm0, %v59_v5, 0.0 }
  0x10   :  { %48 = vst [vmem:[#allocation6] sm:$0x1] %v272_v0  ;;  %v54_v10 = vadd.f32 %v53_v8, %v52_v4  ;;  %v61_v11 = vrot.slane %v60_v9, 4 }
  0x12   :  { %v55_v14 = vrot.slane %v54_v10, 2  ;;  %v62_v15 = vadd.f32 %v61_v11, %v60_v9 }
  0x13   :  { %v67_v3 = vld [vmem:[#allocation2] sm:$0x1] }
  0x14   :  { %v68_v7 = vadd.f32 %v67_v3, %v49_v1  ;;  %v56_v16 = vadd.f32 %v55_v14, %v54_v10  ;;  %v63_v17 = vrot.slane %v62_v15, 2  ;;  %v70_v21 = vld [vmem:[#allocation3] sm:$0x1] }
  0x15   :  { %v73_v25 = vld [vmem:[#allocation4] sm:$0x1] }
  0x16   :  { %69 = vst [vmem:[#allocation2] sm:$0x1] %v68_v7  ;;  %v77_v12 = vld [vmem:[#allocation5] sm:$0x1]  ;;  %v57_v18 = vrot.slane %v56_v16, 1  ;;  %v64_v19 = vadd.f32 %v63_v17, %v62_v15 }
  0x17   :  { %v79_v13 = vadd.f32 %v78_v6, %v77_v12  ;;  %v81_v26 = vld [vmem:[#allocation6] sm:$0x1] }
  0x18   :  { %v58_v23 = vadd.f32 %v57_v18, %v56_v16  ;;  %v65_v24 = vrot.slane %v64_v19, 1 }
  0x19   :  { %80 = vst [vmem:[#allocation5] sm:$0x1] %v79_v13 }
  0x1a   :  { %v71_v27 = vadd.f32 %v70_v21, %v58_v23  ;;  %v74_v28 = vmul.f32 %v58_v23, %v49_v1  ;;  %v66_v29 = vadd.f32 %v65_v24, %v64_v19 }
  0x1c   :  { %72 = vst [vmem:[#allocation3] sm:$0x1] %v71_v27  ;;  %v75_v30 = vadd.f32 %v74_v28, %v73_v25  ;;  %v82_v31 = vadd.f32 %v81_v26, %v66_v29 }
  0x1d   :  { %v87_v20 = vld [vmem:[#allocation2] sm:$0x1] }
  0x1e   :  { %v89_v22 = vsel %vm88_vm1, %v87_v20, 0.0  ;;  %76 = vst [vmem:[#allocation4] sm:$0x1] %v75_v30 }
  0x1f   :  { %90 = vadd.xlane.f32.xlu0 %v89_v22  ;;  %83 = vst [vmem:[#allocation6] sm:$0x1] %v82_v31 }
  0x20   :  { %v121_v38 = vld [vmem:[#allocation5] sm:$0x1] }
  0x21   :  { %v122_v39 = vsel %vm88_vm1, %v121_v38, 0.0 }
  0x23   :  { %v99_v32 = vld [vmem:[#allocation3] sm:$0x1] }
  0x24   :  { %v100_v33 = vsel %vm88_vm1, %v99_v32, 0.0 }
  0x25   :  { %v110_v34 = vld [vmem:[#allocation4] sm:$0x1] }
  0x26   :  { %v111_v35 = vsel %vm88_vm1, %v110_v34, 0.0  ;;  %v132_v36 = vld [vmem:[#allocation6] sm:$0x1] }
  0x27   :  { %101 = vadd.xlane.f32.xlu0 %v100_v33  ;;  %112 = vadd.xlane.f32.xlu1 %v111_v35  ;;  %v133_v37 = vsel %vm88_vm1, %v132_v36, 0.0 }
  0x28   :  { %134 = vadd.xlane.f32.xlu2 %v133_v37 }
  0x2f   :  { %123 = vadd.xlane.f32.xlu1 %v122_v39 }
  0x92   :  { %v91_v40 = vpop.xlane.xlu0 %90 }
  0x93   :  { %v92_v41 = vrot.slane %v91_v40, 4 }
  0x95   :  { %v93_v42 = vadd.f32 %v92_v41, %v91_v40 }
  0x97   :  { %v94_v43 = vrot.slane %v93_v42, 2 }
  0x99   :  { %v95_v44 = vadd.f32 %v94_v43, %v93_v42 }
  0x9a   :  { %v102_v47 = vpop.xlane.xlu0 %101  ;;  %v113_v49 = vpop.xlane.xlu1 %112 }
  0x9b   :  { %v96_v45 = vrot.slane %v95_v44, 1  ;;  %v103_v48 = vrot.slane %v102_v47, 4  ;;  %v114_v51 = vrot.slane %v113_v49, 4  ;;  %v135_v52 = vpop.xlane.xlu2 %134 }
  0x9c   :  { %v136_v53 = vrot.slane %v135_v52, 4 }
  0x9d   :  { %v97_v46 = vadd.f32 %v96_v45, %v95_v44  ;;  %v104_v50 = vadd.f32 %v103_v48, %v102_v47  ;;  %v115_v55 = vadd.f32 %v114_v51, %v113_v49 }
  0x9e   :  { %v137_v56 = vadd.f32 %v136_v53, %v135_v52 }
  0x9f   :  { %186 = vpush %v97_v46  ;;  %v105_v54 = vrot.slane %v104_v50, 2  ;;  %v116_v58 = vrot.slane %v115_v55, 2 }
  0xa0   :  { %v138_v61 = vrot.slane %v137_v56, 2 }
  0xa1   :  { %v106_v57 = vadd.f32 %v105_v54, %v104_v50  ;;  %v117_v60 = vadd.f32 %v116_v58, %v115_v55 }
  0xa2   :  { %v124_v62 = vpop.xlane.xlu1 %123  ;;  %v139_v4 = vadd.f32 %v138_v61, %v137_v56 }
  0xa3   :  { %v107_v59 = vrot.slane %v106_v57, 1  ;;  %v125_v63 = vrot.slane %v124_v62, 4  ;;  %v118_v1 = vrot.slane %v117_v60, 1 }
  0xa4   :  { %v140_v7 = vrot.slane %v139_v4, 1 }
  0xa5   :  { %v108_v0 = vadd.f32 %v107_v59, %v106_v57  ;;  %v126_v2 = vadd.f32 %v125_v63, %v124_v62  ;;  %v119_v3 = vadd.f32 %v118_v1, %v117_v60 }
  0xa6   :  { %v141_v10 = vadd.f32 %v140_v7, %v139_v4 }
  0xa7   :  { %188 = vpush %v108_v0  ;;  %v127_v5 = vrot.slane %v126_v2, 2 }
  0xa8   :  { %190 = vpush %v119_v3 }
  0xa9   :  { %v128_v6 = vadd.f32 %v127_v5, %v126_v2 }
  0xab   :  { %v129_v8 = vrot.slane %v128_v6, 1 }
  0xad   :  { %v130_v9 = vadd.f32 %v129_v8, %v128_v6 }
  0xaf   :  { %192 = vpush %v130_v9 }
  0xb0   :  { %194 = vpush %v141_v10 }
  0xd0   :  { %s187_s0 = spop %186 }
  0xd1   :  { %s147_s23 = smul.f32 %s187_s0, %s187_s0 }
  0xd8   :  { %s189_s1 = spop %188 }
  0xd9   :  { %s144_s19 = smul.f32 %s189_s1, %s187_s0  ;;  %s191_s20 = spop %190 }
  0xda   :  { %s143_s21 = smul.f32 128.0, %s191_s20 }
  0xdb   :  { %s150_s24 = smul.f32 %s189_s1, %s189_s1 }
  0xdc   :  { %s145_s22 = ssub.f32 %s143_s21, %s144_s19 }
  0xe0   :  { %s193_s25 = spop %192 }
  0xe1   :  { %s146_s26 = smul.f32 128.0, %s193_s25  ;;  %s195_s27 = spop %194 }
  0xe2   :  { %s149_s28 = smul.f32 128.0, %s195_s27 }
  0xe3   :  { %s148_s29 = ssub.f32 %s146_s26, %s147_s23 }
  0xe4   :  { %s151_s30 = ssub.f32 %s149_s28, %s150_s24 }
  0xe6   :  { %s152_s3 = smul.f32 %s151_s30, %s148_s29 }
  0xe8   :  { %v153_v11 = vstv %s152_s3 }
  0xe9   :  { %202 = vrsqrt.f32 %v153_v11  ;;  %vm160_vm3 = vweird.f32 %v153_v11 }
  0xef   :  { %v203_v12 = vpop.eup %202 }
  0xf0   :  { %v155_v13 = vmul.f32 %v203_v12, %v153_v11  ;;  %vm161_vm2 = vweird.f32 %v203_v12 }
  0xf1   :  { %vm162_vm4 = vmor %vm160_vm3, %vm161_vm2 }
  0xf2   :  { %v156_v14 = vmul.f32 %v203_v12, %v155_v13 }
  0xf4   :  { %v157_v15 = vmul.f32 0.5, %v156_v14 }
  0xf6   :  { %v158_v16 = vsub.f32 1.5, %v157_v15 }
  0xf8   :  { %v159_v17 = vmul.f32 %v203_v12, %v158_v16 }
  0xfa   :  { %v163_v18 = vsel %vm162_vm4, %v203_v12, %v159_v17 }
  0xfb   :  { %196 = vpush %v163_v18 }
 0x12c   :  { %s197_s7 = spop %196 }
 0x12d   :  { %s165_s8 = smul.f32 %s197_s7, %s145_s22 }
 0x12f   :  { %s166_s9 = ssub.f32 1.0, %s165_s8 }
 0x131   :  { %168 = sst [smem:[#allocation12]] %s166_s9 }
 0x132   :  { %177 = dma.smem_to_hbm %s273_s10, 16, %s175_s6, [#allocation9]  }
 0x133   :  { %268 = dma.done.wait [#allocation9], 16  }
 0x134   :  { %269 = vsyncadd [#allocation9], 4294967280 }
 0x135   :  { %182 = sfence }
 0x136   :  { %183 = vsyncpa [#allocation8], 1 }
 0x137   :  { %184 = vsyncpa [#allocation11], 1 }
 0x138   :  { %185 = vsyncpa [#allocation9], 1 }

</bundles_post_ra>
